<compile_context>
chip_gen: v6e
topology: v6e:2x2x1
jax: 0.10.0
libtpu: 0.0.40
codegen_flags: <defaults>
</compile_context>

<pallas_src>
import functools

import jax
import jax.numpy as jnp
from jax.experimental import pallas as pl
from jax.experimental.pallas import tpu as pltpu


def _ceil_div(a, b):
    return -(-a // b)


def _round_up(a, b):
    return _ceil_div(a, b) * b


def _spp_kernel(x_ref, o_ref, *, pool_list, height, width, offsets, bins_pad):
    # x_ref: (nb, H, W, Ct) channels-last block (C on lanes, W on sublanes).
    # o_ref: (nb, bins_pad, Ct) lane-dense output slab, written once.
    nb = x_ref.shape[0]
    ct = x_ref.shape[3]
    dtype = o_ref.dtype
    kmax = max(pool_list)
    aligned = (height % kmax == 0) and (width % kmax == 0)

    def row_max(h0, h1):
        # Full-width (nb, W, Ct) row loads; reduce over H with elementwise maxes.
        acc = x_ref[:, h0, :, :]
        for hh in range(h0 + 1, h1):
            acc = jnp.maximum(acc, x_ref[:, hh, :, :])
        return acc                                            # (nb, W, Ct)

    def level_direct(k):
        # PyTorch adaptive_max_pool2d bin boundaries (static, never empty).
        vals = []
        for i in range(k):
            h0 = (i * height) // k
            h1 = _ceil_div((i + 1) * height, k)
            hm = row_max(h0, h1)                              # (nb, W, Ct)
            for j in range(k):
                w0 = (j * width) // k
                w1 = _ceil_div((j + 1) * width, k)
                seg = hm[:, w0:w1, :]                         # value slice, no reload
                vals.append(jnp.max(seg, axis=1, keepdims=True))   # (nb, 1, Ct)
        return vals

    # Finest level first; nested coarser levels are derived from its values,
    # so the input block is read exactly once when bin boundaries nest.
    levels = {}
    for k in sorted(set(pool_list), reverse=True):
        reuse = aligned and k != kmax and (kmax % k == 0) and (kmax in levels)
        if reuse:
            r = kmax // k
            fine = levels[kmax]
            vals = []
            for i in range(k):
                for j in range(k):
                    parts = [fine[fi * kmax + fj]
                             for fi in range(i * r, (i + 1) * r)
                             for fj in range(j * r, (j + 1) * r)]
                    vals.append(functools.reduce(jnp.maximum, parts))
            levels[k] = vals
        else:
            levels[k] = level_direct(k)

    # Assemble the whole output block in registers (pool_list order, 8-aligned
    # per-level offsets) and write it with a single contiguous store.
    rows = []
    cursor = 0
    for idx, k in enumerate(pool_list):
        off = offsets[idx]
        if off > cursor:
            rows.append(jnp.zeros((nb, off - cursor, ct), dtype))
            cursor = off
        rows.extend(levels[k])
        cursor += k * k
    if bins_pad > cursor:
        rows.append(jnp.zeros((nb, bins_pad - cursor, ct), dtype))
    o_ref[...] = jnp.concatenate(rows, axis=1).astype(dtype)


def _vmem_capacity_bytes():
    try:
        return int(pltpu.get_tpu_info().vmem_capacity_bytes)
    except Exception:
        return 64 << 20   # conservative (v7x-sized) fallback


def _plan_tiling(n, c, h, w, itemsize):
    """Pick (samples/step, channel tile, padded C, VMEM capacity)."""
    cap = _vmem_capacity_bytes()
    # Generation-aware per-block budget: bigger blocks on 128 MiB parts
    # (v5e/v6e) to amortize per-step overhead, smaller on 64 MiB v7x.
    target = cap // 6 if cap >= (96 << 20) else cap // 12
    target = max(4 << 20, min(24 << 20, target))

    per_ch = h * w * itemsize
    if c * per_ch <= target or c <= 128:
        c_tile, c_pad = c, c
    else:
        c_pad = c if c % 128 == 0 else _round_up(c, 128)
        divisors = [d for d in range(128, c_pad + 1, 128) if c_pad % d == 0]
        fitting = [d for d in divisors if d * per_ch <= target]
        # TODO(synk): add an H-slab ("arbitrary") accumulation grid axis for
        # feature maps so large that even a 128-channel block exceeds the
        # per-block budget (matters most on v7x's 64 MiB VMEM).
        c_tile = max(fitting) if fitting else 128

    blk = max(1, c_tile * per_ch)
    nb = max(1, min(n, target // blk))        # pack samples on small maps
    while n % nb:
        nb -= 1

    # Megacore: keep >= 2 grid steps whenever the problem allows.
    c_blocks = c_pad // c_tile
    if (n // nb) * c_blocks < 2:
        if nb > 1:
            nb = max(1, nb // 2)
            while n % nb:
                nb -= 1
        elif n == 1 and c_tile == c_pad and c_pad % 256 == 0:
            c_tile = c_pad // 2
    return nb, c_tile, c_pad, cap


def spatial_pyramid_pooling(x, pool_list, *, data_format="NCHW"):
    """SpatialPyramidPooling forward (adaptive max pool per pool size, flattened
    c-major and concatenated) matching the PyTorch module.

    data_format="NCHW": drop-in module semantics (one channels-last relayout).
    data_format="NHWC": zero-relayout, single-HBM-pass path (preferred)."""
    pool_list = tuple(int(k) for k in pool_list)
    assert pool_list and all(k >= 1 for k in pool_list)

    if data_format == "NCHW":
        n, c, h, w = x.shape
        x_cl = jnp.transpose(x, (0, 2, 3, 1))     # compatibility glue only
    elif data_format == "NHWC":
        n, h, w, c = x.shape
        x_cl = x
    else:
        raise ValueError(f"unsupported data_format: {data_format}")

    # Per-level bin-row offsets, padded to 8-sublane boundaries.
    offsets = []
    cursor = 0
    for k in pool_list:
        cursor = _round_up(cursor, 8)
        offsets.append(cursor)
        cursor += k * k
    bins_pad = _round_up(cursor, 8)

    itemsize = x.dtype.itemsize
    nb, c_tile, c_pad, cap = _plan_tiling(n, c, h, w, itemsize)
    if c_pad != c:
        x_cl = jnp.pad(x_cl, ((0, 0), (0, 0), (0, 0), (0, c_pad - c)))

    in_blk = nb * h * w * c_tile * itemsize
    out_blk = nb * bins_pad * c_tile * itemsize
    need = 2 * (in_blk + out_blk) + (2 << 20)
    vmem_limit = min(max(16 << 20, need), min(int(cap * 0.625), 96 << 20))

    kernel = functools.partial(
        _spp_kernel, pool_list=pool_list, height=h, width=w,
        offsets=tuple(offsets), bins_pad=bins_pad)

    out = pl.pallas_call(
        kernel,
        out_shape=jax.ShapeDtypeStruct((n, bins_pad, c_pad), x.dtype),
        grid_spec=pltpu.PrefetchScalarGridSpec(
            num_scalar_prefetch=0,
            grid=(n // nb, c_pad // c_tile),
            in_specs=[pl.BlockSpec((nb, h, w, c_tile),
                                   lambda i, j: (i, 0, 0, j))],
            out_specs=pl.BlockSpec((nb, bins_pad, c_tile),
                                   lambda i, j: (i, 0, j)),
        ),
        compiler_params=pltpu.CompilerParams(
            dimension_semantics=("parallel", "parallel"),
            vmem_limit_bytes=vmem_limit,
        ),
    )(x_cl)

    # Tiny glue on the pooled output only: per level, flatten (C, k, k) c-major
    # and concatenate — exactly torch.cat([pool.view(N, -1) ...], dim=1).
    parts = []
    for k, off in zip(pool_list, offsets):
        lvl = out[:, off:off + k * k, :c]                  # (N, k*k, C)
        parts.append(jnp.transpose(lvl, (0, 2, 1)).reshape(n, c * k * k))
    return jnp.concatenate(parts, axis=1)


def _spp_reference(x, pool_list):
    # Pure-JAX reference with PyTorch adaptive_max_pool2d bin semantics (NCHW).
    n, c, h, w = x.shape
    outs = []
    for k in pool_list:
        rows = []
        for i in range(k):
            h0, h1 = (i * h) // k, _ceil_div((i + 1) * h, k)
            cols = []
            for j in range(k):
                w0, w1 = (j * w) // k, _ceil_div((j + 1) * w, k)
                cols.append(jnp.max(x[:, :, h0:h1, w0:w1], axis=(2, 3)))
            rows.append(jnp.stack(cols, axis=-1))          # (N, C, k)
        pool = jnp.stack(rows, axis=-2)                    # (N, C, k, k)
        outs.append(pool.reshape(n, -1))
    return jnp.concatenate(outs, axis=1)


if __name__ == "__main__":
    key = jax.random.PRNGKey(0)
    x = jax.random.normal(key, (2, 4, 16, 16), dtype=jnp.float32)   # NCHW
    pool_list = [1, 2, 4]

    out = spatial_pyramid_pooling(x, pool_list)            # module-faithful path
    out = jax.block_until_ready(out)

    ref = _spp_reference(x, pool_list)
    assert out.shape == (2, 4 * sum(k * k for k in pool_list)), out.shape
    assert jnp.allclose(out, ref), "Pallas SPP (NCHW) mismatch vs reference"

    # Preferred zero-relayout channels-last path gives identical results.
    out_nhwc = spatial_pyramid_pooling(jnp.transpose(x, (0, 2, 3, 1)),
                                       pool_list, data_format="NHWC")
    out_nhwc = jax.block_until_ready(out_nhwc)
    assert jnp.allclose(out_nhwc, ref), "Pallas SPP (NHWC) mismatch vs reference"

    print("KERNEL_OK")
</pallas_src>

<mosaic_0001>
module attributes {stable_mosaic.version = 11 : i64} {
  func.func @_spp_kernel(%arg0: i32, %arg1: i32, %arg2: memref<1x16x16x4xf32, #tpu.memory_space<vmem>>, %arg3: memref<1x32x4xf32, #tpu.memory_space<vmem>>) attributes {dimension_semantics = [#tpu.dimension_semantics<parallel>, #tpu.dimension_semantics<parallel>], iteration_bounds = array<i64: 2, 1>, scalar_prefetch = 0 : i64, scratch_operands = 0 : i64, tpu.core_type = #tpu.core_type<tc>, window_params = [{transform_indices = @transform_0, window_bounds = array<i64: 1, 16, 16, 4>}, {transform_indices = @transform_1, window_bounds = array<i64: 1, 32, 4>}]} {
    %c0 = arith.constant 0 : index
    %c0_0 = arith.constant 0 : index
    %c0_1 = arith.constant 0 : index
    %c0_2 = arith.constant 0 : index
    %0 = vector.load %arg2[%c0, %c0_0, %c0_1, %c0_2] : memref<1x16x16x4xf32, #tpu.memory_space<vmem>>, vector<1x1x16x4xf32>
    %1 = vector.shape_cast %0 : vector<1x1x16x4xf32> to vector<1x16x4xf32>
    %c0_3 = arith.constant 0 : index
    %c1 = arith.constant 1 : index
    %c0_4 = arith.constant 0 : index
    %c0_5 = arith.constant 0 : index
    %2 = vector.load %arg2[%c0_3, %c1, %c0_4, %c0_5] : memref<1x16x16x4xf32, #tpu.memory_space<vmem>>, vector<1x1x16x4xf32>
    %3 = vector.shape_cast %2 : vector<1x1x16x4xf32> to vector<1x16x4xf32>
    %4 = arith.maximumf %1, %3 : vector<1x16x4xf32>
    %c0_6 = arith.constant 0 : index
    %c2 = arith.constant 2 : index
    %c0_7 = arith.constant 0 : index
    %c0_8 = arith.constant 0 : index
    %5 = vector.load %arg2[%c0_6, %c2, %c0_7, %c0_8] : memref<1x16x16x4xf32, #tpu.memory_space<vmem>>, vector<1x1x16x4xf32>
    %6 = vector.shape_cast %5 : vector<1x1x16x4xf32> to vector<1x16x4xf32>
    %7 = arith.maximumf %4, %6 : vector<1x16x4xf32>
    %c0_9 = arith.constant 0 : index
    %c3 = arith.constant 3 : index
    %c0_10 = arith.constant 0 : index
    %c0_11 = arith.constant 0 : index
    %8 = vector.load %arg2[%c0_9, %c3, %c0_10, %c0_11] : memref<1x16x16x4xf32, #tpu.memory_space<vmem>>, vector<1x1x16x4xf32>
    %9 = vector.shape_cast %8 : vector<1x1x16x4xf32> to vector<1x16x4xf32>
    %10 = arith.maximumf %7, %9 : vector<1x16x4xf32>
    %11 = vector.extract_strided_slice %10 {offsets = [0, 0, 0], sizes = [1, 4, 4], strides = [1, 1, 1]} : vector<1x16x4xf32> to vector<1x4x4xf32>
    %cst = arith.constant dense<0xFF800000> : vector<1x4xf32>
    %12 = vector.multi_reduction <maximumf>, %11, %cst [1] : vector<1x4x4xf32> to vector<1x4xf32>
    %13 = vector.shape_cast %12 : vector<1x4xf32> to vector<1x1x4xf32>
    %14 = vector.extract_strided_slice %10 {offsets = [0, 4, 0], sizes = [1, 4, 4], strides = [1, 1, 1]} : vector<1x16x4xf32> to vector<1x4x4xf32>
    %cst_12 = arith.constant dense<0xFF800000> : vector<1x4xf32>
    %15 = vector.multi_reduction <maximumf>, %14, %cst_12 [1] : vector<1x4x4xf32> to vector<1x4xf32>
    %16 = vector.shape_cast %15 : vector<1x4xf32> to vector<1x1x4xf32>
    %17 = vector.extract_strided_slice %10 {offsets = [0, 8, 0], sizes = [1, 4, 4], strides = [1, 1, 1]} : vector<1x16x4xf32> to vector<1x4x4xf32>
    %cst_13 = arith.constant dense<0xFF800000> : vector<1x4xf32>
    %18 = vector.multi_reduction <maximumf>, %17, %cst_13 [1] : vector<1x4x4xf32> to vector<1x4xf32>
    %19 = vector.shape_cast %18 : vector<1x4xf32> to vector<1x1x4xf32>
    %20 = vector.extract_strided_slice %10 {offsets = [0, 12, 0], sizes = [1, 4, 4], strides = [1, 1, 1]} : vector<1x16x4xf32> to vector<1x4x4xf32>
    %cst_14 = arith.constant dense<0xFF800000> : vector<1x4xf32>
    %21 = vector.multi_reduction <maximumf>, %20, %cst_14 [1] : vector<1x4x4xf32> to vector<1x4xf32>
    %22 = vector.shape_cast %21 : vector<1x4xf32> to vector<1x1x4xf32>
    %c0_15 = arith.constant 0 : index
    %c4 = arith.constant 4 : index
    %c0_16 = arith.constant 0 : index
    %c0_17 = arith.constant 0 : index
    %23 = vector.load %arg2[%c0_15, %c4, %c0_16, %c0_17] : memref<1x16x16x4xf32, #tpu.memory_space<vmem>>, vector<1x1x16x4xf32>
    %24 = vector.shape_cast %23 : vector<1x1x16x4xf32> to vector<1x16x4xf32>
    %c0_18 = arith.constant 0 : index
    %c5 = arith.constant 5 : index
    %c0_19 = arith.constant 0 : index
    %c0_20 = arith.constant 0 : index
    %25 = vector.load %arg2[%c0_18, %c5, %c0_19, %c0_20] : memref<1x16x16x4xf32, #tpu.memory_space<vmem>>, vector<1x1x16x4xf32>
    %26 = vector.shape_cast %25 : vector<1x1x16x4xf32> to vector<1x16x4xf32>
    %27 = arith.maximumf %24, %26 : vector<1x16x4xf32>
    %c0_21 = arith.constant 0 : index
    %c6 = arith.constant 6 : index
    %c0_22 = arith.constant 0 : index
    %c0_23 = arith.constant 0 : index
    %28 = vector.load %arg2[%c0_21, %c6, %c0_22, %c0_23] : memref<1x16x16x4xf32, #tpu.memory_space<vmem>>, vector<1x1x16x4xf32>
    %29 = vector.shape_cast %28 : vector<1x1x16x4xf32> to vector<1x16x4xf32>
    %30 = arith.maximumf %27, %29 : vector<1x16x4xf32>
    %c0_24 = arith.constant 0 : index
    %c7 = arith.constant 7 : index
    %c0_25 = arith.constant 0 : index
    %c0_26 = arith.constant 0 : index
    %31 = vector.load %arg2[%c0_24, %c7, %c0_25, %c0_26] : memref<1x16x16x4xf32, #tpu.memory_space<vmem>>, vector<1x1x16x4xf32>
    %32 = vector.shape_cast %31 : vector<1x1x16x4xf32> to vector<1x16x4xf32>
    %33 = arith.maximumf %30, %32 : vector<1x16x4xf32>
    %34 = vector.extract_strided_slice %33 {offsets = [0, 0, 0], sizes = [1, 4, 4], strides = [1, 1, 1]} : vector<1x16x4xf32> to vector<1x4x4xf32>
    %cst_27 = arith.constant dense<0xFF800000> : vector<1x4xf32>
    %35 = vector.multi_reduction <maximumf>, %34, %cst_27 [1] : vector<1x4x4xf32> to vector<1x4xf32>
    %36 = vector.shape_cast %35 : vector<1x4xf32> to vector<1x1x4xf32>
    %37 = vector.extract_strided_slice %33 {offsets = [0, 4, 0], sizes = [1, 4, 4], strides = [1, 1, 1]} : vector<1x16x4xf32> to vector<1x4x4xf32>
    %cst_28 = arith.constant dense<0xFF800000> : vector<1x4xf32>
    %38 = vector.multi_reduction <maximumf>, %37, %cst_28 [1] : vector<1x4x4xf32> to vector<1x4xf32>
    %39 = vector.shape_cast %38 : vector<1x4xf32> to vector<1x1x4xf32>
    %40 = vector.extract_strided_slice %33 {offsets = [0, 8, 0], sizes = [1, 4, 4], strides = [1, 1, 1]} : vector<1x16x4xf32> to vector<1x4x4xf32>
    %cst_29 = arith.constant dense<0xFF800000> : vector<1x4xf32>
    %41 = vector.multi_reduction <maximumf>, %40, %cst_29 [1] : vector<1x4x4xf32> to vector<1x4xf32>
    %42 = vector.shape_cast %41 : vector<1x4xf32> to vector<1x1x4xf32>
    %43 = vector.extract_strided_slice %33 {offsets = [0, 12, 0], sizes = [1, 4, 4], strides = [1, 1, 1]} : vector<1x16x4xf32> to vector<1x4x4xf32>
    %cst_30 = arith.constant dense<0xFF800000> : vector<1x4xf32>
    %44 = vector.multi_reduction <maximumf>, %43, %cst_30 [1] : vector<1x4x4xf32> to vector<1x4xf32>
    %45 = vector.shape_cast %44 : vector<1x4xf32> to vector<1x1x4xf32>
    %c0_31 = arith.constant 0 : index
    %c8 = arith.constant 8 : index
    %c0_32 = arith.constant 0 : index
    %c0_33 = arith.constant 0 : index
    %46 = vector.load %arg2[%c0_31, %c8, %c0_32, %c0_33] : memref<1x16x16x4xf32, #tpu.memory_space<vmem>>, vector<1x1x16x4xf32>
    %47 = vector.shape_cast %46 : vector<1x1x16x4xf32> to vector<1x16x4xf32>
    %c0_34 = arith.constant 0 : index
    %c9 = arith.constant 9 : index
    %c0_35 = arith.constant 0 : index
    %c0_36 = arith.constant 0 : index
    %48 = vector.load %arg2[%c0_34, %c9, %c0_35, %c0_36] : memref<1x16x16x4xf32, #tpu.memory_space<vmem>>, vector<1x1x16x4xf32>
    %49 = vector.shape_cast %48 : vector<1x1x16x4xf32> to vector<1x16x4xf32>
    %50 = arith.maximumf %47, %49 : vector<1x16x4xf32>
    %c0_37 = arith.constant 0 : index
    %c10 = arith.constant 10 : index
    %c0_38 = arith.constant 0 : index
    %c0_39 = arith.constant 0 : index
    %51 = vector.load %arg2[%c0_37, %c10, %c0_38, %c0_39] : memref<1x16x16x4xf32, #tpu.memory_space<vmem>>, vector<1x1x16x4xf32>
    %52 = vector.shape_cast %51 : vector<1x1x16x4xf32> to vector<1x16x4xf32>
    %53 = arith.maximumf %50, %52 : vector<1x16x4xf32>
    %c0_40 = arith.constant 0 : index
    %c11 = arith.constant 11 : index
    %c0_41 = arith.constant 0 : index
    %c0_42 = arith.constant 0 : index
    %54 = vector.load %arg2[%c0_40, %c11, %c0_41, %c0_42] : memref<1x16x16x4xf32, #tpu.memory_space<vmem>>, vector<1x1x16x4xf32>
    %55 = vector.shape_cast %54 : vector<1x1x16x4xf32> to vector<1x16x4xf32>
    %56 = arith.maximumf %53, %55 : vector<1x16x4xf32>
    %57 = vector.extract_strided_slice %56 {offsets = [0, 0, 0], sizes = [1, 4, 4], strides = [1, 1, 1]} : vector<1x16x4xf32> to vector<1x4x4xf32>
    %cst_43 = arith.constant dense<0xFF800000> : vector<1x4xf32>
    %58 = vector.multi_reduction <maximumf>, %57, %cst_43 [1] : vector<1x4x4xf32> to vector<1x4xf32>
    %59 = vector.shape_cast %58 : vector<1x4xf32> to vector<1x1x4xf32>
    %60 = vector.extract_strided_slice %56 {offsets = [0, 4, 0], sizes = [1, 4, 4], strides = [1, 1, 1]} : vector<1x16x4xf32> to vector<1x4x4xf32>
    %cst_44 = arith.constant dense<0xFF800000> : vector<1x4xf32>
    %61 = vector.multi_reduction <maximumf>, %60, %cst_44 [1] : vector<1x4x4xf32> to vector<1x4xf32>
    %62 = vector.shape_cast %61 : vector<1x4xf32> to vector<1x1x4xf32>
    %63 = vector.extract_strided_slice %56 {offsets = [0, 8, 0], sizes = [1, 4, 4], strides = [1, 1, 1]} : vector<1x16x4xf32> to vector<1x4x4xf32>
    %cst_45 = arith.constant dense<0xFF800000> : vector<1x4xf32>
    %64 = vector.multi_reduction <maximumf>, %63, %cst_45 [1] : vector<1x4x4xf32> to vector<1x4xf32>
    %65 = vector.shape_cast %64 : vector<1x4xf32> to vector<1x1x4xf32>
    %66 = vector.extract_strided_slice %56 {offsets = [0, 12, 0], sizes = [1, 4, 4], strides = [1, 1, 1]} : vector<1x16x4xf32> to vector<1x4x4xf32>
    %cst_46 = arith.constant dense<0xFF800000> : vector<1x4xf32>
    %67 = vector.multi_reduction <maximumf>, %66, %cst_46 [1] : vector<1x4x4xf32> to vector<1x4xf32>
    %68 = vector.shape_cast %67 : vector<1x4xf32> to vector<1x1x4xf32>
    %c0_47 = arith.constant 0 : index
    %c12 = arith.constant 12 : index
    %c0_48 = arith.constant 0 : index
    %c0_49 = arith.constant 0 : index
    %69 = vector.load %arg2[%c0_47, %c12, %c0_48, %c0_49] : memref<1x16x16x4xf32, #tpu.memory_space<vmem>>, vector<1x1x16x4xf32>
    %70 = vector.shape_cast %69 : vector<1x1x16x4xf32> to vector<1x16x4xf32>
    %c0_50 = arith.constant 0 : index
    %c13 = arith.constant 13 : index
    %c0_51 = arith.constant 0 : index
    %c0_52 = arith.constant 0 : index
    %71 = vector.load %arg2[%c0_50, %c13, %c0_51, %c0_52] : memref<1x16x16x4xf32, #tpu.memory_space<vmem>>, vector<1x1x16x4xf32>
    %72 = vector.shape_cast %71 : vector<1x1x16x4xf32> to vector<1x16x4xf32>
    %73 = arith.maximumf %70, %72 : vector<1x16x4xf32>
    %c0_53 = arith.constant 0 : index
    %c14 = arith.constant 14 : index
    %c0_54 = arith.constant 0 : index
    %c0_55 = arith.constant 0 : index
    %74 = vector.load %arg2[%c0_53, %c14, %c0_54, %c0_55] : memref<1x16x16x4xf32, #tpu.memory_space<vmem>>, vector<1x1x16x4xf32>
    %75 = vector.shape_cast %74 : vector<1x1x16x4xf32> to vector<1x16x4xf32>
    %76 = arith.maximumf %73, %75 : vector<1x16x4xf32>
    %c0_56 = arith.constant 0 : index
    %c15 = arith.constant 15 : index
    %c0_57 = arith.constant 0 : index
    %c0_58 = arith.constant 0 : index
    %77 = vector.load %arg2[%c0_56, %c15, %c0_57, %c0_58] : memref<1x16x16x4xf32, #tpu.memory_space<vmem>>, vector<1x1x16x4xf32>
    %78 = vector.shape_cast %77 : vector<1x1x16x4xf32> to vector<1x16x4xf32>
    %79 = arith.maximumf %76, %78 : vector<1x16x4xf32>
    %80 = vector.extract_strided_slice %79 {offsets = [0, 0, 0], sizes = [1, 4, 4], strides = [1, 1, 1]} : vector<1x16x4xf32> to vector<1x4x4xf32>
    %cst_59 = arith.constant dense<0xFF800000> : vector<1x4xf32>
    %81 = vector.multi_reduction <maximumf>, %80, %cst_59 [1] : vector<1x4x4xf32> to vector<1x4xf32>
    %82 = vector.shape_cast %81 : vector<1x4xf32> to vector<1x1x4xf32>
    %83 = vector.extract_strided_slice %79 {offsets = [0, 4, 0], sizes = [1, 4, 4], strides = [1, 1, 1]} : vector<1x16x4xf32> to vector<1x4x4xf32>
    %cst_60 = arith.constant dense<0xFF800000> : vector<1x4xf32>
    %84 = vector.multi_reduction <maximumf>, %83, %cst_60 [1] : vector<1x4x4xf32> to vector<1x4xf32>
    %85 = vector.shape_cast %84 : vector<1x4xf32> to vector<1x1x4xf32>
    %86 = vector.extract_strided_slice %79 {offsets = [0, 8, 0], sizes = [1, 4, 4], strides = [1, 1, 1]} : vector<1x16x4xf32> to vector<1x4x4xf32>
    %cst_61 = arith.constant dense<0xFF800000> : vector<1x4xf32>
    %87 = vector.multi_reduction <maximumf>, %86, %cst_61 [1] : vector<1x4x4xf32> to vector<1x4xf32>
    %88 = vector.shape_cast %87 : vector<1x4xf32> to vector<1x1x4xf32>
    %89 = vector.extract_strided_slice %79 {offsets = [0, 12, 0], sizes = [1, 4, 4], strides = [1, 1, 1]} : vector<1x16x4xf32> to vector<1x4x4xf32>
    %cst_62 = arith.constant dense<0xFF800000> : vector<1x4xf32>
    %90 = vector.multi_reduction <maximumf>, %89, %cst_62 [1] : vector<1x4x4xf32> to vector<1x4xf32>
    %91 = vector.shape_cast %90 : vector<1x4xf32> to vector<1x1x4xf32>
    %92 = arith.maximumf %13, %16 : vector<1x1x4xf32>
    %93 = arith.maximumf %92, %36 : vector<1x1x4xf32>
    %94 = arith.maximumf %93, %39 : vector<1x1x4xf32>
    %95 = arith.maximumf %19, %22 : vector<1x1x4xf32>
    %96 = arith.maximumf %95, %42 : vector<1x1x4xf32>
    %97 = arith.maximumf %96, %45 : vector<1x1x4xf32>
    %98 = arith.maximumf %59, %62 : vector<1x1x4xf32>
    %99 = arith.maximumf %98, %82 : vector<1x1x4xf32>
    %100 = arith.maximumf %99, %85 : vector<1x1x4xf32>
    %101 = arith.maximumf %65, %68 : vector<1x1x4xf32>
    %102 = arith.maximumf %101, %88 : vector<1x1x4xf32>
    %103 = arith.maximumf %102, %91 : vector<1x1x4xf32>
    %104 = arith.maximumf %13, %16 : vector<1x1x4xf32>
    %105 = arith.maximumf %104, %19 : vector<1x1x4xf32>
    %106 = arith.maximumf %105, %22 : vector<1x1x4xf32>
    %107 = arith.maximumf %106, %36 : vector<1x1x4xf32>
    %108 = arith.maximumf %107, %39 : vector<1x1x4xf32>
    %109 = arith.maximumf %108, %42 : vector<1x1x4xf32>
    %110 = arith.maximumf %109, %45 : vector<1x1x4xf32>
    %111 = arith.maximumf %110, %59 : vector<1x1x4xf32>
    %112 = arith.maximumf %111, %62 : vector<1x1x4xf32>
    %113 = arith.maximumf %112, %65 : vector<1x1x4xf32>
    %114 = arith.maximumf %113, %68 : vector<1x1x4xf32>
    %115 = arith.maximumf %114, %82 : vector<1x1x4xf32>
    %116 = arith.maximumf %115, %85 : vector<1x1x4xf32>
    %117 = arith.maximumf %116, %88 : vector<1x1x4xf32>
    %118 = arith.maximumf %117, %91 : vector<1x1x4xf32>
    %cst_63 = arith.constant 0.000000e+00 : f32
    %119 = vector.broadcast %cst_63 : f32 to vector<1x7x4xf32>
    %cst_64 = arith.constant 0.000000e+00 : f32
    %120 = vector.broadcast %cst_64 : f32 to vector<1x4x4xf32>
    %121 = tpu.concatenate %118, %119, %94, %97, %100, %103, %120, %13, %16, %19, %22, %36, %39, %42, %45, %59 in 1 : vector<1x1x4xf32>, vector<1x7x4xf32>, vector<1x1x4xf32>, vector<1x1x4xf32>, vector<1x1x4xf32>, vector<1x1x4xf32>, vector<1x4x4xf32>, vector<1x1x4xf32>, vector<1x1x4xf32>, vector<1x1x4xf32>, vector<1x1x4xf32>, vector<1x1x4xf32>, vector<1x1x4xf32>, vector<1x1x4xf32>, vector<1x1x4xf32>, vector<1x1x4xf32> -> vector<1x25x4xf32>
    %122 = tpu.concatenate %62, %65, %68, %82, %85, %88, %91 in 1 : vector<1x1x4xf32>, vector<1x1x4xf32>, vector<1x1x4xf32>, vector<1x1x4xf32>, vector<1x1x4xf32>, vector<1x1x4xf32>, vector<1x1x4xf32> -> vector<1x7x4xf32>
    %123 = tpu.concatenate %121, %122 in 1 : vector<1x25x4xf32>, vector<1x7x4xf32> -> vector<1x32x4xf32>
    %c0_65 = arith.constant 0 : index
    %c0_66 = arith.constant 0 : index
    %c0_67 = arith.constant 0 : index
    %124 = vector.load %arg3[%c0_65, %c0_66, %c0_67] : memref<1x32x4xf32, #tpu.memory_space<vmem>>, vector<1x32x4xf32>
    tpu.vector_store %arg3[%c0_65, %c0_66, %c0_67], %123 {strides = array<i32>} : memref<1x32x4xf32, #tpu.memory_space<vmem>>, vector<1x32x4xf32>,
    return
  }
  func.func @transform_0(%arg0: i32, %arg1: i32) -> (i32, i32, i32, i32) {
    %c0_i32 = arith.constant 0 : i32
    %c0_i32_0 = arith.constant 0 : i32
    %c0_i32_1 = arith.constant 0 : i32
    return %arg0, %c0_i32, %c0_i32_0, %arg1 : i32, i32, i32, i32
  }
  func.func @transform_1(%arg0: i32, %arg1: i32) -> (i32, i32, i32) {
    %c0_i32 = arith.constant 0 : i32
    %c0_i32_0 = arith.constant 0 : i32
    return %arg0, %c0_i32, %arg1 : i32, i32, i32
  }
}

</mosaic_0001>

<bundles_post_ra>
// kernel: tpu_custom_call.1
= control target key start
LH: loop header
LB: loop body
LE: loop exit
PB: predicated region body
PF: predicated region fallthrough
CT: control target
= control target key end

     0   :  { %s577_s6 = smov 0   ;;  %s579_s7 = smov 0   ;;  %s733_s0 = inlined_call_operand.vmem [shape: f32[2,16,16,4], index: 0, kind: input, shape index: {}]   ;;  %s734_s1 = inlined_call_operand.vmem [shape: f32[2,32,4], index: 1, kind: output, shape index: {}]  }
   0x1   :  { %s581_s8 = smov 0  }
   0x2 LB: > { %s23_s9 = sadd.s32 1, %s561_s7  ;;  %p480_p0 = scmp.ge.s32.totalorder %s565_s8, 1  ;;  %s565_s8 = sphi %s581_s8, %s11_s8   ;;  %s561_s7 = sphi %s579_s7, %s736_s7   ;;  %s557_s6 = sphi %s577_s6, %s735_s6  }
   0x3   : > { %p25_p1 = scmp.ge.s32.totalorder %s23_s9, 2  ;;  %p106_p2 = scmp.lt.s32.totalorder %s565_s8, 3 }
   0x5   : > { %s738_s9 = smov (%p25_p1, %s23_s9), 0  ;;  %p107_p3 = pnand %p480_p0, %p106_p2 }
   0x6   : > { %p132_p4 = scmp.lt.s32.totalorder (!%p107_p3), %s557_s6, 1 }
   0x7   : > { %110 = sbr.rel (%p107_p3) target bundleno = 80 (0x50), region = 24 }
   0xc   : > { %s740_s6 = smov (!%p132_p4, %s557_s6), 1  ;;  %vm165_vm0 = vcmask 27648   ;;  %vm173_vm1 = vcmask 31748   ;;  %vm359_vm2 = vcmask 1040384   ;;  %vm362_vm3 = vcmask 1041408  }
   0xd   : > { %s517_s10 = sshll.u32 %s740_s6, 8  ;;  %vm364_vm4 = vcmask 1042432   ;;  %vm366_vm5 = vcmask 1043456   ;;  %vm372_vm6 = vcmask 1044480   ;;  %vm376_vm7 = vcmask 1046528   ;;  %s518_s14 = sshll.u32 %s740_s6, 5 }
   0xe   : > { %s601_s13 = scalar_lea.vmem %s733_s0, %s517_s10  ;;  %vm388_vm8 = vcmask 31744   ;;  %s147_s17 = scalar_lea.vmem %s734_s1, %s518_s14  ;;  %vm374_vm9 = vcmask 1045504  }
   0xf   : > { %v148_v0 = vld [vmem:[%s601_s13] sm:$0xff]  ;;  %v149_v1 = vld [vmem:[%s601_s13 + $0x8] sm:$0xff]  ;;  %v485_v2 = vld [vmem:[%s601_s13 + $0x10] sm:$0xff] }
  0x10   : > { %v486_v3 = vld [vmem:[%s601_s13 + $0x18] sm:$0xff]  ;;  %v153_v4 = vmax.f32 %v148_v0, %v485_v2  ;;  %v487_v5 = vld [vmem:[%s601_s13 + $0x20] sm:$0xff]  ;;  %v488_v6 = vld [vmem:[%s601_s13 + $0x28] sm:$0xff] }
  0x11   : > { %v154_v7 = vmax.f32 %v149_v1, %v486_v3  ;;  %v489_v8 = vld [vmem:[%s601_s13 + $0x30] sm:$0xff]  ;;  %v490_v9 = vld [vmem:[%s601_s13 + $0x38] sm:$0xff]  ;;  %v491_v10 = vld [vmem:[%s601_s13 + $0x40] sm:$0xff] }
  0x12   : > { %v158_v11 = vmax.f32 %v153_v4, %v487_v5  ;;  %v492_v12 = vld [vmem:[%s601_s13 + $0x48] sm:$0xff]  ;;  %v493_v13 = vld [vmem:[%s601_s13 + $0x50] sm:$0xff]  ;;  %v494_v14 = vld [vmem:[%s601_s13 + $0x58] sm:$0xff] }
  0x13   : > { %v159_v15 = vmax.f32 %v154_v7, %v488_v6  ;;  %v201_v16 = vmax.f32 %v491_v10, %v493_v13  ;;  %v202_v17 = vmax.f32 %v492_v12, %v494_v14  ;;  %v495_v18 = vld [vmem:[%s601_s13 + $0x60] sm:$0xff]  ;;  %v496_v19 = vld [vmem:[%s601_s13 + $0x68] sm:$0xff]  ;;  %v497_v21 = vld [vmem:[%s601_s13 + $0x70] sm:$0xff] }
  0x14   : > { %v163_v20 = vmax.f32 %v158_v11, %v489_v8  ;;  %v499_v22 = vld [vmem:[%s601_s13 + $0x80] sm:$0xff]  ;;  %v500_v23 = vld [vmem:[%s601_s13 + $0x88] sm:$0xff]  ;;  %v498_v27 = vld [vmem:[%s601_s13 + $0x78] sm:$0xff] }
  0x15   : > { %v164_v24 = vmax.f32 %v159_v15, %v490_v9  ;;  %v206_v25 = vmax.f32 %v201_v16, %v495_v18  ;;  %v207_v26 = vmax.f32 %v202_v17, %v496_v19  ;;  %v501_v28 = vld [vmem:[%s601_s13 + $0x90] sm:$0xff]  ;;  %v502_v29 = vld [vmem:[%s601_s13 + $0x98] sm:$0xff]  ;;  %v503_v34 = vld [vmem:[%s601_s13 + $0xa0] sm:$0xff] }
  0x16   : > { %v166_v30 = vsel %vm165_vm0, %v163_v20, -inf  ;;  %v174_v31 = vsel %vm173_vm1, %v163_v20, -inf  ;;  %v247_v32 = vmax.f32 %v499_v22, %v501_v28  ;;  %v248_v33 = vmax.f32 %v500_v23, %v502_v29  ;;  %v504_v35 = vld [vmem:[%s601_s13 + $0xa8] sm:$0xff]  ;;  %v505_v12 = vld [vmem:[%s601_s13 + $0xb0] sm:$0xff]  ;;  %v506_v13 = vld [vmem:[%s601_s13 + $0xb8] sm:$0xff] }
  0x17   : > { %v167_v36 = vrot.slane %v166_v30, 4  ;;  %v175_v37 = vrot.slane %v174_v31, 4  ;;  %v181_v38 = vsel %vm165_vm0, %v164_v24, -inf  ;;  %v188_v39 = vsel %vm173_vm1, %v164_v24, -inf  ;;  %v507_v14 = vld [vmem:[%s601_s13 + $0xc0] sm:$0xff]  ;;  %v508_v19 = vld [vmem:[%s601_s13 + $0xc8] sm:$0xff] }
  0x18   : > { %v182_v40 = vrot.slane %v181_v38, 4  ;;  %v189_v41 = vrot.slane %v188_v39, 4  ;;  %v211_v42 = vmax.f32 %v206_v25, %v497_v21  ;;  %v212_v43 = vmax.f32 %v207_v26, %v498_v27  ;;  %v509_v20 = vld [vmem:[%s601_s13 + $0xd0] sm:$0xff]  ;;  %v510_v21 = vld [vmem:[%s601_s13 + $0xd8] sm:$0xff] }
  0x19   : > { %v168_v44 = vmax.f32 %v166_v30, %v167_v36  ;;  %v176_v45 = vmax.f32 %v174_v31, %v175_v37  ;;  %v252_v46 = vmax.f32 %v247_v32, %v503_v34  ;;  %v253_v47 = vmax.f32 %v248_v33, %v504_v35  ;;  %v511_v34 = vld [vmem:[%s601_s13 + $0xe0] sm:$0xff]  ;;  %v512_v35 = vld [vmem:[%s601_s13 + $0xe8] sm:$0xff] }
  0x1a   : > { %v183_v48 = vmax.f32 %v181_v38, %v182_v40  ;;  %v190_v49 = vmax.f32 %v188_v39, %v189_v41  ;;  %v213_v50 = vsel %vm165_vm0, %v211_v42, -inf  ;;  %v220_v51 = vsel %vm173_vm1, %v211_v42, -inf }
  0x1b   : > { %v169_v52 = vrot.slane %v168_v44, 2  ;;  %v177_v53 = vrot.slane %v176_v45, 2  ;;  %v214_v54 = vrot.slane %v213_v50, 4  ;;  %v221_v55 = vrot.slane %v220_v51, 4 }
  0x1c   : > { %v184_v56 = vrot.slane %v183_v48, 2  ;;  %v191_v57 = vrot.slane %v190_v49, 2  ;;  %v227_v58 = vsel %vm165_vm0, %v212_v43, -inf  ;;  %v234_v59 = vsel %vm173_vm1, %v212_v43, -inf }
  0x1d   : > { %v170_v60 = vmax.f32 %v168_v44, %v169_v52  ;;  %v178_v61 = vmax.f32 %v176_v45, %v177_v53  ;;  %v215_v62 = vmax.f32 %v213_v50, %v214_v54  ;;  %v222_v63 = vmax.f32 %v220_v51, %v221_v55  ;;  %v513_v44 = vld [vmem:[%s601_s13 + $0xf0] sm:$0xff]  ;;  %v514_v45 = vld [vmem:[%s601_s13 + $0xf8] sm:$0xff] }
  0x1e   : > { %v185_v0 = vmax.f32 %v183_v48, %v184_v56  ;;  %v192_v1 = vmax.f32 %v190_v49, %v191_v57  ;;  %v228_v2 = vrot.slane %v227_v58, 4  ;;  %v235_v3 = vrot.slane %v234_v59, 4 }
  0x1f   : > { %v171_v4 = vrot.slane %v170_v60, 1  ;;  %v179_v5 = vrot.slane %v178_v61, 1  ;;  %v216_v6 = vrot.slane %v215_v62, 2  ;;  %v223_v7 = vrot.slane %v222_v63, 2 }
  0x20   : > { %v186_v8 = vrot.slane %v185_v0, 1  ;;  %v193_v9 = vrot.slane %v192_v1, 1  ;;  %v229_v10 = vmax.f32 %v227_v58, %v228_v2  ;;  %v236_v11 = vmax.f32 %v234_v59, %v235_v3 }
  0x21   : > { %v636_v15 = vmax.f32 %v170_v60, %v171_v4  ;;  %v638_v16 = vmax.f32 %v178_v61, %v179_v5  ;;  %v217_v17 = vmax.f32 %v215_v62, %v216_v6  ;;  %v224_v18 = vmax.f32 %v222_v63, %v223_v7 }
  0x22   : > { %v643_v22 = vmax.f32 %v185_v0, %v186_v8  ;;  %v645_v23 = vmax.f32 %v192_v1, %v193_v9  ;;  %v230_v24 = vrot.slane %v229_v10, 2  ;;  %v237_v25 = vrot.slane %v236_v11, 2 }
  0x23   : > { %v218_v26 = vrot.slane %v217_v17, 1  ;;  %v225_v27 = vrot.slane %v224_v18, 1  ;;  %v257_v28 = vmax.f32 %v252_v46, %v505_v12  ;;  %v258_v29 = vmax.f32 %v253_v47, %v506_v13 }
  0x24   : > { %v231_v30 = vmax.f32 %v229_v10, %v230_v24  ;;  %v238_v31 = vmax.f32 %v236_v11, %v237_v25  ;;  %v293_v32 = vmax.f32 %v507_v14, %v509_v20  ;;  %v294_v33 = vmax.f32 %v508_v19, %v510_v21 }
  0x25   : > { %v649_v36 = vmax.f32 %v217_v17, %v218_v26  ;;  %v651_v37 = vmax.f32 %v224_v18, %v225_v27  ;;  %v259_v38 = vsel %vm165_vm0, %v257_v28, -inf  ;;  %v266_v39 = vsel %vm173_vm1, %v257_v28, -inf }
  0x26   : > { %v232_v40 = vrot.slane %v231_v30, 1  ;;  %v239_v41 = vrot.slane %v238_v31, 1  ;;  %v260_v42 = vrot.slane %v259_v38, 4  ;;  %v267_v43 = vrot.slane %v266_v39, 4 }
  0x27   : > { %v273_v46 = vsel %vm165_vm0, %v258_v29, -inf  ;;  %v280_v47 = vsel %vm173_vm1, %v258_v29, -inf  ;;  %v298_v48 = vmax.f32 %v293_v32, %v511_v34  ;;  %v299_v49 = vmax.f32 %v294_v33, %v512_v35 }
  0x28   : > { %v659_v50 = vmax.f32 %v231_v30, %v232_v40  ;;  %v661_v51 = vmax.f32 %v238_v31, %v239_v41  ;;  %v261_v52 = vmax.f32 %v259_v38, %v260_v42  ;;  %v268_v53 = vmax.f32 %v266_v39, %v267_v43 }
  0x29   : > { %v274_v54 = vrot.slane %v273_v46, 4  ;;  %v281_v55 = vrot.slane %v280_v47, 4  ;;  %v303_v56 = vmax.f32 %v298_v48, %v513_v44  ;;  %v304_v57 = vmax.f32 %v299_v49, %v514_v45 }
  0x2a   : > { %v262_v58 = vrot.slane %v261_v52, 2  ;;  %v269_v59 = vrot.slane %v268_v53, 2  ;;  %v333_v60 = vmax.f32 %v636_v15, %v638_v16  ;;  %v336_v61 = vmax.f32 %v643_v22, %v645_v23 }
  0x2b   : > { %v275_v62 = vmax.f32 %v273_v46, %v274_v54  ;;  %v282_v63 = vmax.f32 %v280_v47, %v281_v55  ;;  %v305_v0 = vsel %vm165_vm0, %v303_v56, -inf  ;;  %v312_v1 = vsel %vm173_vm1, %v303_v56, -inf }
  0x2c   : > { %v263_v2 = vmax.f32 %v261_v52, %v262_v58  ;;  %v270_v3 = vmax.f32 %v268_v53, %v269_v59  ;;  %v306_v4 = vrot.slane %v305_v0, 4  ;;  %v313_v5 = vrot.slane %v312_v1, 4 }
  0x2d   : > { %v276_v6 = vrot.slane %v275_v62, 2  ;;  %v283_v7 = vrot.slane %v282_v63, 2  ;;  %v319_v8 = vsel %vm165_vm0, %v304_v57, -inf  ;;  %v326_v9 = vsel %vm173_vm1, %v304_v57, -inf }
  0x2e   : > { %v264_v10 = vrot.slane %v263_v2, 1  ;;  %v271_v11 = vrot.slane %v270_v3, 1  ;;  %v307_v12 = vmax.f32 %v305_v0, %v306_v4  ;;  %v314_v13 = vmax.f32 %v312_v1, %v313_v5 }
  0x2f   : > { %v277_v14 = vmax.f32 %v275_v62, %v276_v6  ;;  %v284_v17 = vmax.f32 %v282_v63, %v283_v7  ;;  %v320_v18 = vrot.slane %v319_v8, 4  ;;  %v327_v19 = vrot.slane %v326_v9, 4 }
  0x30   : > { %v671_v20 = vmax.f32 %v263_v2, %v264_v10  ;;  %v673_v21 = vmax.f32 %v270_v3, %v271_v11  ;;  %v308_v24 = vrot.slane %v307_v12, 2  ;;  %v315_v25 = vrot.slane %v314_v13, 2 }
  0x31   : > { %v278_v26 = vrot.slane %v277_v14, 1  ;;  %v285_v27 = vrot.slane %v284_v17, 1  ;;  %v321_v28 = vmax.f32 %v319_v8, %v320_v18  ;;  %v328_v29 = vmax.f32 %v326_v9, %v327_v19 }
  0x32   : > { %v309_v30 = vmax.f32 %v307_v12, %v308_v24  ;;  %v316_v31 = vmax.f32 %v314_v13, %v315_v25  ;;  %v345_v32 = vmax.f32 %v333_v60, %v643_v22  ;;  %v334_v33 = vmax.f32 %v333_v60, %v649_v36 }
  0x33   : > { %v279_v34 = vmax.f32 %v277_v14, %v278_v26  ;;  %v286_v35 = vmax.f32 %v284_v17, %v285_v27  ;;  %v322_v38 = vrot.slane %v321_v28, 2  ;;  %v329_v39 = vrot.slane %v328_v29, 2 }
  0x34   : > { %v310_v40 = vrot.slane %v309_v30, 1  ;;  %v317_v41 = vrot.slane %v316_v31, 1  ;;  %v346_v42 = vmax.f32 %v345_v32, %v645_v23  ;;  %v335_v43 = vmax.f32 %v334_v33, %v651_v37 }
  0x35   : > { %v323_v44 = vmax.f32 %v321_v28, %v322_v38  ;;  %v330_v45 = vmax.f32 %v328_v29, %v329_v39  ;;  %v337_v46 = vmax.f32 %v336_v61, %v659_v50  ;;  %v339_v47 = vmax.f32 %v671_v20, %v673_v21 }
  0x36   : > { %v311_v48 = vmax.f32 %v309_v30, %v310_v40  ;;  %v318_v49 = vmax.f32 %v316_v31, %v317_v41  ;;  %v347_v52 = vmax.f32 %v346_v42, %v649_v36  ;;  %v342_v53 = vmax.f32 %v279_v34, %v286_v35 }
  0x37   : > { %v324_v54 = vrot.slane %v323_v44, 1  ;;  %v331_v55 = vrot.slane %v330_v45, 1  ;;  %v338_v56 = vmax.f32 %v337_v46, %v661_v51  ;;  %v368_v57 = vsel %vm359_vm2, %v636_v15, %v638_v16 }
  0x38   : > { %v348_v58 = vmax.f32 %v347_v52, %v651_v37  ;;  %v340_v59 = vmax.f32 %v339_v47, %v311_v48  ;;  %v369_v60 = vsel %vm362_vm3, %v368_v57, %v643_v22  ;;  %v378_v61 = vsel %vm359_vm2, %v673_v21, %v279_v34 }
  0x39   : > { %v325_v62 = vmax.f32 %v323_v44, %v324_v54  ;;  %v332_v63 = vmax.f32 %v330_v45, %v331_v55  ;;  %v361_v0 = vsel %vm359_vm2, %v335_v43, %v338_v56  ;;  %v370_v1 = vsel %vm364_vm4, %v369_v60, %v645_v23 }
  0x3a   : > { %v349_v2 = vmax.f32 %v348_v58, %v659_v50  ;;  %v341_v15 = vmax.f32 %v340_v59, %v318_v49  ;;  %v371_v16 = vsel %vm366_vm5, %v370_v1, %v649_v36  ;;  %v379_v3 = vsel %vm362_vm3, %v378_v61, %v286_v35 }
  0x3b   : > { %v343_v22 = vmax.f32 %v342_v53, %v325_v62  ;;  %v380_v4 = vsel %vm364_vm4, %v379_v3, %v311_v48  ;;  %v373_v5 = vsel %vm372_vm6, %v371_v16, %v651_v37 }
  0x3c   : > { %v350_v23 = vmax.f32 %v349_v2, %v661_v51  ;;  %v363_v6 = vsel %vm362_vm3, %v361_v0, %v341_v15  ;;  %v381_v7 = vsel %vm366_vm5, %v380_v4, %v318_v49  ;;  %v375_v36 = vsel %vm374_vm9, %v373_v5, %v659_v50 }
  0x3d   : > { %v344_v8 = vmax.f32 %v343_v22, %v332_v63  ;;  %v382_v9 = vsel %vm372_vm6, %v381_v7, %v325_v62  ;;  %v377_v10 = vsel %vm376_vm7, %v375_v36, %v661_v51 }
  0x3e   : > { %v351_v11 = vmax.f32 %v350_v23, %v671_v20  ;;  %391 = vst.msk [vmem:[%s147_s17 + $0x10] sm:$0xff] %vm388_vm8, %v377_v10  ;;  %v383_v37 = vsel %vm374_vm9, %v382_v9, %v332_v63 }
  0x3f   : > { %v365_v12 = vsel %vm364_vm4, %v363_v6, %v344_v8  ;;  %v385_v13 = vrot.slane %v383_v37, 7 }
  0x40   : > { %v352_v14 = vmax.f32 %v351_v11, %v673_v21  ;;  %v367_v17 = vsel %vm366_vm5, %v365_v12, 0.0 }
  0x41   : > { %390 = vst.msk [vmem:[%s147_s17 + $0x8] sm:$0xff] %vm388_vm8, %v367_v17  ;;  %v387_v50 = vsel %vm359_vm2, %v671_v20, %v385_v13 }
  0x42   : > { %v353_v18 = vmax.f32 %v352_v14, %v279_v34  ;;  %392 = vst.msk [vmem:[%s147_s17 + $0x18] sm:$0xff] %vm388_vm8, %v387_v50 }
  0x44   : > { %v354_v51 = vmax.f32 %v353_v18, %v286_v35 }
  0x46   : > { %v355_v19 = vmax.f32 %v354_v51, %v311_v48 }
  0x48   : > { %v356_v24 = vmax.f32 %v355_v19, %v318_v49 }
  0x4a   : > { %v357_v25 = vmax.f32 %v356_v24, %v325_v62 }
  0x4c   : > { %v358_v26 = vmax.f32 %v357_v25, %v332_v63 }
  0x4e   : > { %v360_v27 = vsel %vm359_vm2, %v358_v26, 0.0 }
  0x4f   : > { %389 = vst.msk [vmem:[%s147_s17] sm:$0xff] %vm388_vm8, %v360_v27 }
  0x50 PF: > { %s11_s8 = sadd.s32 1, %s565_s8   ;;  %s735_s6 = smov %s561_s7 }
  0x51   : > { %p8_p5 = scmp.ge.s32.totalorder %s11_s8, 4   ;;  %s736_s7 = smov %s738_s9 }
  0x53   :  { %10 = sbr.rel (!%p8_p5) target bundleno = 2 (0x2), region = 69 }

</bundles_post_ra>
